<compile_context>
chip_gen: v5e
topology: v5e:2x2
jax: 0.10.0
libtpu: 0.0.40
codegen_flags: <defaults>
</compile_context>

<pallas_src>
import jax
import jax.numpy as jnp
from jax.experimental import pallas as pl
from jax.experimental.pallas import tpu as pltpu


def _copy_kernel(x_ref, o_ref):
    # Straight contiguous copy of one lane-dense (tile_rows, cols) block.
    o_ref[...] = x_ref[...]


def _pallas_copy_rows(x2: jax.Array, tile_rows: int) -> jax.Array:
    """Row-tiled, auto-pipelined 2D copy. Last (ragged) row-block is masked."""
    rows, cols = x2.shape
    itemsize = jnp.dtype(x2.dtype).itemsize
    grid = (pl.cdiv(rows, tile_rows),)
    return pl.pallas_call(
        _copy_kernel,
        out_shape=jax.ShapeDtypeStruct((rows, cols), x2.dtype),
        grid=grid,
        in_specs=[pl.BlockSpec((tile_rows, cols), lambda i: (i, 0))],
        out_specs=pl.BlockSpec((tile_rows, cols), lambda i: (i, 0)),
        compiler_params=pltpu.CompilerParams(
            dimension_semantics=("parallel",),
        ),
        cost_estimate=pl.CostEstimate(
            flops=0,
            transcendentals=0,
            bytes_accessed=2 * rows * cols * itemsize,
        ),
    )(x2)


def flatten(x: jax.Array) -> jax.Array:
    """Pallas equivalent of Flatten.forward: x.view(x.size(0), -1)."""
    b = x.shape[0]
    flat = 1
    for d in x.shape[1:]:
        flat *= d
    total = b * flat

    itemsize = jnp.dtype(x.dtype).itemsize
    # Sublane packing granularity: 8 rows for 32-bit, 16 for 16-bit, 32 for 8-bit.
    sub = {4: 8, 2: 16, 1: 32}.get(itemsize, 8)
    budget_bytes = 2 * 1024 * 1024  # per in/out buffer; x4 double-buffered ≈ 8 MiB

    # Pick a lane-dense slab width L (multiple of 128) dividing the element count,
    # preferring wide L while keeping at least one full sublane group of rows.
    L = None
    for cand in (2048, 1024, 512, 256, 128):
        if total % cand == 0 and total // cand >= sub:
            L = cand
            break
    if L is None:
        for cand in (2048, 1024, 512, 256, 128):
            if total % cand == 0:
                L = cand
                break

    if L is not None:
        rows = total // L
        x2 = x.reshape(rows, L)  # metadata-only reshape of a contiguous array
        target_rows = max(sub, (budget_bytes // (L * itemsize)) // sub * sub)
        tile_rows = rows if rows <= target_rows else target_rows
        out = _pallas_copy_rows(x2, tile_rows)
    else:
        # TODO(synk): element count not a multiple of 128 — no lane-dense slab
        # exists; fall back to a single whole-array block (correct, unpipelined).
        x2 = x.reshape(b, flat)
        out = _pallas_copy_rows(x2, b)

    # Final (free) reshape back to the Flatten output shape.
    return out.reshape(b, flat)


if __name__ == "__main__":
    key = jax.random.PRNGKey(0)
    # Small shapes consistent with a VGG-style feature map: (B, C, H, W)
    x = jax.random.normal(key, (2, 4, 16, 16), dtype=jnp.float32)

    out = flatten(x)
    jax.block_until_ready(out)

    # Correctness check against the pure-JAX reference (torch .view semantics).
    ref = x.reshape(x.shape[0], -1)
    assert out.shape == (2, 4 * 16 * 16), out.shape
    assert out.dtype == x.dtype
    assert bool(jnp.array_equal(out, ref)), "flatten mismatch vs reference"

    print("KERNEL_OK")
</pallas_src>

<mosaic_0001>
module attributes {stable_mosaic.version = 11 : i64} {
  func.func @_copy_kernel(%arg0: i32, %arg1: memref<8x256xf32, #tpu.memory_space<vmem>>, %arg2: memref<8x256xf32, #tpu.memory_space<vmem>>) attributes {dimension_semantics = [#tpu.dimension_semantics<parallel>], iteration_bounds = array<i64: 1>, scalar_prefetch = 0 : i64, scratch_operands = 0 : i64, tpu.core_type = #tpu.core_type<tc>, window_params = [{transform_indices = @transform_0, window_bounds = array<i64: 8, 256>}, {transform_indices = @transform_1, window_bounds = array<i64: 8, 256>}]} {
    %c0 = arith.constant 0 : index
    %c0_0 = arith.constant 0 : index
    %0 = vector.load %arg1[%c0, %c0_0] : memref<8x256xf32, #tpu.memory_space<vmem>>, vector<8x256xf32>
    %c0_1 = arith.constant 0 : index
    %c0_2 = arith.constant 0 : index
    %1 = vector.load %arg2[%c0_1, %c0_2] : memref<8x256xf32, #tpu.memory_space<vmem>>, vector<8x256xf32>
    tpu.vector_store %arg2[%c0_1, %c0_2], %0 {strides = array<i32>} : memref<8x256xf32, #tpu.memory_space<vmem>>, vector<8x256xf32>,
    return
  }
  func.func @transform_0(%arg0: i32) -> (i32, i32) {
    %c0_i32 = arith.constant 0 : i32
    %c0_i32_0 = arith.constant 0 : i32
    return %arg0, %c0_i32 : i32, i32
  }
  func.func @transform_1(%arg0: i32) -> (i32, i32) {
    %c0_i32 = arith.constant 0 : i32
    %c0_i32_0 = arith.constant 0 : i32
    return %arg0, %c0_i32 : i32, i32
  }
}

</mosaic_0001>

<bundles_post_ra>
// kernel: tpu_custom_call.1
= control target key start
LH: loop header
LB: loop body
LE: loop exit
PB: predicated region body
PF: predicated region fallthrough
CT: control target
= control target key end

     0   :  { %6 = vsyncpa [#allocation3], 0  ;;  %s116_s0 = inlined_call_operand.hbm [shape: f32[8,256], index: 0, kind: input, shape index: {}]   ;;  %s117_s1 = inlined_call_operand.hbm [shape: f32[8,256], index: 1, kind: output, shape index: {}]  }
   0x1   :  { %7 = vsyncpa [#allocation4], 0  ;;  %s13_s8 = sshll.u32 %s116_s0, 4  ;;  %s98_s9 = smov [#allocation2]   ;;  %s14_s8 = int_to_ptr.hbm [resolvable:$true] %s13_s8 }
   0x2   :  { %s15_s10 = sshll.u32 %s98_s9, 4  ;;  %s16_s10 = int_to_ptr.vmem [resolvable:$true] %s15_s10 }
   0x3   :  { %18 = dma.hbm_to_vmem [thread:$0]  %s14_s8, 256, %s16_s10, [#allocation3]  }
   0x4   :  { %94 = dma.done.wait [#allocation3], 256  }
   0x5   :  { %95 = vsyncadd [#allocation3], 4294967040  ;;  %s99_s11 = smov [#allocation5]   ;;  %s34_s15 = sshll.u32 %s117_s1, 4  ;;  %v23_v0 = vld [vmem:[#allocation2] sm:$0xff]  ;;  %v24_v1 = vld [vmem:[#allocation2 + $0x8] sm:$0xff]  ;;  %s35_s15 = int_to_ptr.hbm [resolvable:$true] %s34_s15 }
   0x6   :  { %s32_s12 = sshll.u32 %s99_s11, 4  ;;  %25 = vst [vmem:[#allocation5] sm:$0xff] %v23_v0  ;;  %s33_s12 = int_to_ptr.vmem [resolvable:$true] %s32_s12 }
   0x7   :  { %26 = vst [vmem:[#allocation5 + $0x8] sm:$0xff] %v24_v1 }
   0x8   :  { %37 = dma.vmem_to_hbm [thread:$0]  %s33_s12, 256, %s35_s15, [#allocation4]  }
   0x9   :  { %96 = dma.done.wait [#allocation4], 256  }
   0xa   :  { %97 = vsyncadd [#allocation4], 4294967040 }
   0xb   :  { %42 = vsyncpa [#allocation3], 1 }
   0xc   :  { %43 = vsyncpa [#allocation4], 1 }

</bundles_post_ra>
